<compile_context>
chip_gen: v5e
topology: v5e:2x2
jax: 0.10.0
libtpu: 0.0.40
codegen_flags: <defaults>
</compile_context>

<pallas_src>
import functools

import jax
import jax.numpy as jnp
from jax.experimental import pallas as pl
from jax.experimental.pallas import tpu as pltpu


def _focal_loss_kernel(*refs, gamma, n_classes, s_tile, tiles_per_split,
                       valid_px, has_weight):
    if has_weight:
        logits_ref, target_ref, w_ref, out_ref = refs
    else:
        logits_ref, target_ref, out_ref = refs
        w_ref = None

    sp = pl.program_id(1)          # spatial split (parallel, megacore on v7x)
    t = pl.program_id(2)           # spatial tile within the split (arbitrary)

    logits = logits_ref[...].astype(jnp.float32)         # (C, S_tile, 128)
    tgt = target_ref[...]                                # (S_tile, 128) int32

    # numerically-stable log-sum-exp over the class axis (leading, non-tiled
    # axis -> dense elementwise VALU ops, no XLU sublane reduce)
    m = jnp.max(logits, axis=0)                                     # (S_tile,128)
    lse = m + jnp.log(jnp.sum(jnp.exp(logits - m[None]), axis=0))   # (S_tile,128)

    # gather the target-class logit via one-hot select over the class axis
    class_ids = jax.lax.broadcasted_iota(jnp.int32, (n_classes, s_tile, 128), 0)
    eq = class_ids == tgt[None]                                     # (C,S_tile,128)
    logit_t = jnp.sum(jnp.where(eq, logits, 0.0), axis=0)           # (S_tile,128)

    ce = lse - logit_t            # unweighted per-pixel cross-entropy
    pred = jnp.exp(-ce)           # softmax prob of the target class
    if has_weight:
        # in-kernel w[target]: chain of selects reusing the one-hot compares;
        # weight vector lives in SMEM, read as scalars.
        w_t = jnp.zeros_like(ce)
        for ci in range(n_classes):
            w_t = jnp.where(eq[ci], w_ref[ci], w_t)
        log_pred = w_t * ce
    else:
        log_pred = ce
    # gamma is a static Python int -> lowers to VPU multiplies, not EUP pow
    focal = (1.0 - pred) ** gamma * log_pred                        # (S_tile,128)

    @pl.when(t == 0)
    def _():
        out_ref[...] = jnp.zeros_like(out_ref)

    def _accum(vals):
        if s_tile > 8:
            vals = vals.reshape(s_tile // 8, 8, 128).sum(axis=0)    # dense adds
        out_ref[...] += vals

    # only tiles whose range extends past the valid pixel count need masking
    tile_base = (sp * tiles_per_split + t) * (s_tile * 128)
    needs_mask = tile_base + s_tile * 128 > valid_px

    @pl.when(needs_mask)
    def _():
        row = jax.lax.broadcasted_iota(jnp.int32, (s_tile, 128), 0)
        lane = jax.lax.broadcasted_iota(jnp.int32, (s_tile, 128), 1)
        gidx = tile_base + row * 128 + lane
        _accum(jnp.where(gidx < valid_px, focal, 0.0))

    @pl.when(jnp.logical_not(needs_mask))
    def _():
        _accum(focal)


def focal_loss(prediction, target, gamma=2, weight=None, *, tile_rows=None,
               hw_splits=None, vmem_budget_bytes=16 * 1024 * 1024):
    """prediction: (N, C, H, W) float logits; target: (N, 1, H, W) int class ids."""
    n, c, h, w_sp = prediction.shape
    hw = h * w_sp

    # keep gamma static/integer so the power is plain multiplies on the VPU
    if isinstance(gamma, float) and float(gamma).is_integer():
        gamma = int(gamma)

    has_weight = weight is not None
    itemsize = jnp.dtype(prediction.dtype).itemsize
    row_align = 8 if itemsize >= 4 else (16 if itemsize == 2 else 32)

    # spatial pixels laid out dense as (sublane rows) x (128 lanes)
    s_valid = pl.cdiv(hw, 128)

    # rows-per-tile from the VMEM budget (double-buffered logits + target),
    # capped at 256 rows (32K pixels) -- or the whole image when it is smaller
    if tile_rows is None:
        bytes_per_row = 2 * 128 * (c * itemsize + 4)
        tile_rows = vmem_budget_bytes // max(1, bytes_per_row)
    tile_rows = max(row_align, min(int(tile_rows), 256))
    tile_rows = (tile_rows // row_align) * row_align
    if s_valid <= tile_rows:
        tile_rows = max(row_align, pl.cdiv(s_valid, row_align) * row_align)

    tiles_total = pl.cdiv(s_valid, tile_rows)

    # megacore (v7x): split the spatial axis so both TCs get work when N is small
    if hw_splits is None:
        hw_splits = 2 if (n == 1 and tiles_total >= 2) else 1
    hw_splits = max(1, min(int(hw_splits), tiles_total))
    tiles_per_split = pl.cdiv(tiles_total, hw_splits)

    s_padded = hw_splits * tiles_per_split * tile_rows
    hw_padded = s_padded * 128

    logits = prediction.reshape(n, c, hw)          # free reshape, NCHW preserved
    tgt = target.reshape(n, hw).astype(jnp.int32)
    if hw_padded != hw:
        logits = jnp.pad(logits, ((0, 0), (0, 0), (0, hw_padded - hw)))
        tgt = jnp.pad(tgt, ((0, 0), (0, hw_padded - hw)))
    logits = logits.reshape(n, c, s_padded, 128)   # pixels -> (sublanes, lanes)
    tgt = tgt.reshape(n, s_padded, 128)

    inputs = [logits, tgt]
    in_specs = [
        pl.BlockSpec((None, c, tile_rows, 128),
                     lambda b, sp, t: (b, 0, sp * tiles_per_split + t, 0)),
        pl.BlockSpec((None, tile_rows, 128),
                     lambda b, sp, t: (b, sp * tiles_per_split + t, 0)),
    ]
    if has_weight:
        inputs.append(jnp.asarray(weight, jnp.float32).reshape(-1))
        in_specs.append(pl.BlockSpec(memory_space=pltpu.MemorySpace.SMEM))

    grid = (n, hw_splits, tiles_per_split)
    kernel = functools.partial(
        _focal_loss_kernel, gamma=gamma, n_classes=c, s_tile=tile_rows,
        tiles_per_split=tiles_per_split, valid_px=hw, has_weight=has_weight)

    partials = pl.pallas_call(
        kernel,
        out_shape=jax.ShapeDtypeStruct((n * hw_splits, 8, 128), jnp.float32),
        grid_spec=pltpu.PrefetchScalarGridSpec(
            num_scalar_prefetch=0,
            grid=grid,
            in_specs=in_specs,
            out_specs=pl.BlockSpec((None, 8, 128),
                                   lambda b, sp, t: (b * hw_splits + sp, 0, 0)),
        ),
        compiler_params=pltpu.CompilerParams(
            dimension_semantics=("parallel", "parallel", "arbitrary"),
            vmem_limit_bytes=32 * 1024 * 1024,
        ),
    )(*inputs)

    # (n*splits, 8, 128) vector partials -> mean over all (unpadded) pixels
    return jnp.sum(partials) / jnp.float32(n * hw)


def _reference_focal_loss(prediction, target, gamma=2, weight=None):
    n, c, h, w_sp = prediction.shape
    logits = jnp.transpose(prediction, (0, 2, 3, 1)).reshape(-1, c).astype(jnp.float32)
    tgt = target.reshape(-1).astype(jnp.int32)
    if weight is None:
        weight = jnp.ones((c,), jnp.float32)
    logp = jax.nn.log_softmax(logits, axis=-1)
    ce = -jnp.take_along_axis(logp, tgt[:, None], axis=-1)[:, 0]
    log_pred = jnp.asarray(weight, jnp.float32)[tgt] * ce
    pred = jnp.exp(-ce)
    return jnp.mean((1.0 - pred) ** gamma * log_pred)


if __name__ == "__main__":
    key = jax.random.PRNGKey(0)
    k1, k2, k3, k4, k5 = jax.random.split(key, 5)

    # 1) module defaults: gamma=2, no class weight
    N, C, H, W = 2, 4, 16, 16
    prediction = jax.random.normal(k1, (N, C, H, W), dtype=jnp.float32)
    target = jax.random.randint(k2, (N, 1, H, W), 0, C, dtype=jnp.int32)
    loss = jax.block_until_ready(focal_loss(prediction, target, gamma=2))
    ref = _reference_focal_loss(prediction, target, gamma=2)
    assert jnp.allclose(loss, ref, rtol=1e-5, atol=1e-5), (loss, ref)

    # 2) per-class weight path (weight gathered in-kernel from SMEM)
    wvec = jax.random.uniform(k3, (C,), dtype=jnp.float32) + 0.5
    loss_w = jax.block_until_ready(focal_loss(prediction, target, gamma=2, weight=wvec))
    ref_w = _reference_focal_loss(prediction, target, gamma=2, weight=wvec)
    assert jnp.allclose(loss_w, ref_w, rtol=1e-5, atol=1e-5), (loss_w, ref_w)

    # 3) N=1, multi-tile + spatial split (v7x megacore path) + weights
    N3, C3, H3, W3 = 1, 3, 40, 40
    pred3 = jax.random.normal(k4, (N3, C3, H3, W3), dtype=jnp.float32)
    tgt3 = jax.random.randint(k5, (N3, 1, H3, W3), 0, C3, dtype=jnp.int32)
    w3 = jnp.asarray([0.7, 1.3, 2.1], jnp.float32)
    loss3 = jax.block_until_ready(
        focal_loss(pred3, tgt3, gamma=2, weight=w3, tile_rows=8, hw_splits=2))
    ref3 = _reference_focal_loss(pred3, tgt3, gamma=2, weight=w3)
    assert jnp.allclose(loss3, ref3, rtol=1e-5, atol=1e-5), (loss3, ref3)

    # 4) bf16 logits pass straight through (kernel upcasts on load)
    pred_bf16 = prediction.astype(jnp.bfloat16)
    loss_bf = jax.block_until_ready(focal_loss(pred_bf16, target, gamma=2))
    ref_bf = _reference_focal_loss(pred_bf16, target, gamma=2)
    assert jnp.allclose(loss_bf, ref_bf, rtol=1e-4, atol=1e-4), (loss_bf, ref_bf)

    # 5) larger tile (s_tile > 8) exercising the in-kernel row-fold accumulator
    N5, C5, H5, W5 = 1, 4, 48, 48
    pred5 = jax.random.normal(k1, (N5, C5, H5, W5), dtype=jnp.float32)
    tgt5 = jax.random.randint(k2, (N5, 1, H5, W5), 0, C5, dtype=jnp.int32)
    loss5 = jax.block_until_ready(focal_loss(pred5, tgt5, gamma=2, tile_rows=16))
    ref5 = _reference_focal_loss(pred5, tgt5, gamma=2)
    assert jnp.allclose(loss5, ref5, rtol=1e-5, atol=1e-5), (loss5, ref5)

    print("KERNEL_OK")
</pallas_src>

<mosaic_0001>
module attributes {stable_mosaic.version = 11 : i64} {
  func.func @_focal_loss_kernel(%arg0: i32, %arg1: i32, %arg2: i32, %arg3: memref<1x4x8x128xf32, #tpu.memory_space<vmem>>, %arg4: memref<1x8x128xi32, #tpu.memory_space<vmem>>, %arg5: memref<1x8x128xf32, #tpu.memory_space<vmem>>) attributes {dimension_semantics = [#tpu.dimension_semantics<parallel>, #tpu.dimension_semantics<parallel>, #tpu.dimension_semantics<arbitrary>], iteration_bounds = array<i64: 2, 1, 1>, scalar_prefetch = 0 : i64, scratch_operands = 0 : i64, tpu.core_type = #tpu.core_type<tc>, window_params = [{transform_indices = @transform_0, window_bounds = array<i64: 1, 4, 8, 128>}, {transform_indices = @transform_1, window_bounds = array<i64: 1, 8, 128>}, {transform_indices = @transform_2, window_bounds = array<i64: 1, 8, 128>}]} {
    %c0 = arith.constant 0 : index
    %c0_0 = arith.constant 0 : index
    %c0_1 = arith.constant 0 : index
    %c0_2 = arith.constant 0 : index
    %0 = vector.load %arg3[%c0, %c0_0, %c0_1, %c0_2] : memref<1x4x8x128xf32, #tpu.memory_space<vmem>>, vector<1x4x8x128xf32>
    %1 = vector.shape_cast %0 : vector<1x4x8x128xf32> to vector<4x8x128xf32>
    %c0_3 = arith.constant 0 : index
    %c0_4 = arith.constant 0 : index
    %c0_5 = arith.constant 0 : index
    %2 = vector.load %arg4[%c0_3, %c0_4, %c0_5] : memref<1x8x128xi32, #tpu.memory_space<vmem>>, vector<1x8x128xi32>
    %3 = vector.shape_cast %2 : vector<1x8x128xi32> to vector<8x128xi32>
    %cst = arith.constant dense<0xFF800000> : vector<8x128xf32>
    %4 = vector.multi_reduction <maximumf>, %1, %cst [0] : vector<4x8x128xf32> to vector<8x128xf32>
    %5 = vector.shape_cast %4 : vector<8x128xf32> to vector<1x8x128xf32>
    %6 = vector.broadcast %5 : vector<1x8x128xf32> to vector<4x8x128xf32>
    %7 = arith.subf %1, %6 : vector<4x8x128xf32>
    %8 = math.exp %7 : vector<4x8x128xf32>
    %cst_6 = arith.constant dense<0.000000e+00> : vector<8x128xf32>
    %9 = vector.multi_reduction <add>, %8, %cst_6 [0] : vector<4x8x128xf32> to vector<8x128xf32>
    %10 = math.log %9 : vector<8x128xf32>
    %11 = arith.addf %4, %10 : vector<8x128xf32>
    %12 = tpu.iota {dimensions = array<i32: 0>} : vector<4x8x128xi32>
    %13 = vector.shape_cast %3 : vector<8x128xi32> to vector<1x8x128xi32>
    %14 = vector.broadcast %13 : vector<1x8x128xi32> to vector<4x8x128xi32>
    %15 = arith.cmpi eq, %12, %14 : vector<4x8x128xi32>
    %cst_7 = arith.constant 0.000000e+00 : f32
    %16 = vector.broadcast %cst_7 : f32 to vector<4x8x128xf32>
    %17 = arith.select %15, %1, %16 : vector<4x8x128xi1>, vector<4x8x128xf32>
    %cst_8 = arith.constant dense<0.000000e+00> : vector<8x128xf32>
    %18 = vector.multi_reduction <add>, %17, %cst_8 [0] : vector<4x8x128xf32> to vector<8x128xf32>
    %19 = arith.subf %11, %18 : vector<8x128xf32>
    %cst_9 = arith.constant 0.000000e+00 : f32
    %20 = vector.broadcast %cst_9 : f32 to vector<8x128xf32>
    %21 = arith.subf %20, %19 : vector<8x128xf32>
    %22 = math.exp %21 : vector<8x128xf32>
    %cst_10 = arith.constant 1.000000e+00 : f32
    %23 = vector.broadcast %cst_10 : f32 to vector<8x128xf32>
    %24 = arith.subf %23, %22 : vector<8x128xf32>
    %25 = arith.mulf %24, %24 : vector<8x128xf32>
    %26 = arith.mulf %25, %19 : vector<8x128xf32>
    %c0_i32 = arith.constant 0 : i32
    %27 = arith.cmpi eq, %arg2, %c0_i32 : i32
    %28 = arith.extui %27 : i1 to i32
    %c0_i32_11 = arith.constant 0 : i32
    %29 = arith.cmpi ne, %28, %c0_i32_11 : i32
    scf.if %29 {
      %cst_15 = arith.constant 0.000000e+00 : f32
      %40 = vector.broadcast %cst_15 : f32 to vector<8x128xf32>
      %c0_16 = arith.constant 0 : index
      %c0_17 = arith.constant 0 : index
      %c0_18 = arith.constant 0 : index
      %41 = vector.load %arg5[%c0_16, %c0_17, %c0_18] : memref<1x8x128xf32, #tpu.memory_space<vmem>>, vector<1x8x128xf32>
      %42 = vector.shape_cast %41 : vector<1x8x128xf32> to vector<8x128xf32>
      %43 = vector.shape_cast %40 : vector<8x128xf32> to vector<1x8x128xf32>
      tpu.vector_store %arg5[%c0_16, %c0_17, %c0_18], %43 {strides = array<i32>} : memref<1x8x128xf32, #tpu.memory_space<vmem>>, vector<1x8x128xf32>,
    } else {
    }
    %c1_i32 = arith.constant 1 : i32
    %30 = arith.muli %arg1, %c1_i32 : i32
    %31 = arith.addi %30, %arg2 : i32
    %c1024_i32 = arith.constant 1024 : i32
    %32 = arith.muli %31, %c1024_i32 : i32
    %c1024_i32_12 = arith.constant 1024 : i32
    %33 = arith.addi %32, %c1024_i32_12 : i32
    %c256_i32 = arith.constant 256 : i32
    %34 = arith.cmpi sgt, %33, %c256_i32 : i32
    %35 = arith.extui %34 : i1 to i32
    %c0_i32_13 = arith.constant 0 : i32
    %36 = arith.cmpi ne, %35, %c0_i32_13 : i32
    scf.if %36 {
      %40 = tpu.iota {dimensions = array<i32: 0>} : vector<8x128xi32>
      %41 = tpu.iota {dimensions = array<i32: 1>} : vector<8x128xi32>
      %c128_i32 = arith.constant 128 : i32
      %42 = vector.broadcast %c128_i32 : i32 to vector<8x128xi32>
      %43 = arith.muli %40, %42 : vector<8x128xi32>
      %44 = vector.broadcast %32 : i32 to vector<8x128xi32>
      %45 = arith.addi %44, %43 : vector<8x128xi32>
      %46 = arith.addi %45, %41 : vector<8x128xi32>
      %c256_i32_15 = arith.constant 256 : i32
      %47 = vector.broadcast %c256_i32_15 : i32 to vector<8x128xi32>
      %48 = arith.cmpi slt, %46, %47 : vector<8x128xi32>
      %cst_16 = arith.constant 0.000000e+00 : f32
      %49 = vector.broadcast %cst_16 : f32 to vector<8x128xf32>
      %50 = arith.select %48, %26, %49 : vector<8x128xi1>, vector<8x128xf32>
      %c0_17 = arith.constant 0 : index
      %c0_18 = arith.constant 0 : index
      %c0_19 = arith.constant 0 : index
      %51 = vector.load %arg5[%c0_17, %c0_18, %c0_19] : memref<1x8x128xf32, #tpu.memory_space<vmem>>, vector<1x8x128xf32>
      %52 = vector.shape_cast %51 : vector<1x8x128xf32> to vector<8x128xf32>
      %53 = arith.addf %52, %50 : vector<8x128xf32>
      %c0_20 = arith.constant 0 : index
      %c0_21 = arith.constant 0 : index
      %c0_22 = arith.constant 0 : index
      %54 = vector.load %arg5[%c0_20, %c0_21, %c0_22] : memref<1x8x128xf32, #tpu.memory_space<vmem>>, vector<1x8x128xf32>
      %55 = vector.shape_cast %54 : vector<1x8x128xf32> to vector<8x128xf32>
      %56 = vector.shape_cast %53 : vector<8x128xf32> to vector<1x8x128xf32>
      tpu.vector_store %arg5[%c0_20, %c0_21, %c0_22], %56 {strides = array<i32>} : memref<1x8x128xf32, #tpu.memory_space<vmem>>, vector<1x8x128xf32>,
    } else {
    }
    %true = arith.constant true
    %37 = arith.xori %34, %true : i1
    %38 = arith.extui %37 : i1 to i32
    %c0_i32_14 = arith.constant 0 : i32
    %39 = arith.cmpi ne, %38, %c0_i32_14 : i32
    scf.if %39 {
      %c0_15 = arith.constant 0 : index
      %c0_16 = arith.constant 0 : index
      %c0_17 = arith.constant 0 : index
      %40 = vector.load %arg5[%c0_15, %c0_16, %c0_17] : memref<1x8x128xf32, #tpu.memory_space<vmem>>, vector<1x8x128xf32>
      %41 = vector.shape_cast %40 : vector<1x8x128xf32> to vector<8x128xf32>
      %42 = arith.addf %41, %26 : vector<8x128xf32>
      %c0_18 = arith.constant 0 : index
      %c0_19 = arith.constant 0 : index
      %c0_20 = arith.constant 0 : index
      %43 = vector.load %arg5[%c0_18, %c0_19, %c0_20] : memref<1x8x128xf32, #tpu.memory_space<vmem>>, vector<1x8x128xf32>
      %44 = vector.shape_cast %43 : vector<1x8x128xf32> to vector<8x128xf32>
      %45 = vector.shape_cast %42 : vector<8x128xf32> to vector<1x8x128xf32>
      tpu.vector_store %arg5[%c0_18, %c0_19, %c0_20], %45 {strides = array<i32>} : memref<1x8x128xf32, #tpu.memory_space<vmem>>, vector<1x8x128xf32>,
    } else {
    }
    return
  }
  func.func @transform_0(%arg0: i32, %arg1: i32, %arg2: i32) -> (i32, i32, i32, i32) {
    %c1_i32 = arith.constant 1 : i32
    %0 = arith.muli %arg1, %c1_i32 : i32
    %1 = arith.addi %0, %arg2 : i32
    %c0_i32 = arith.constant 0 : i32
    %c0_i32_0 = arith.constant 0 : i32
    %c0_i32_1 = arith.constant 0 : i32
    return %arg0, %c0_i32, %1, %c0_i32_0 : i32, i32, i32, i32
  }
  func.func @transform_1(%arg0: i32, %arg1: i32, %arg2: i32) -> (i32, i32, i32) {
    %c1_i32 = arith.constant 1 : i32
    %0 = arith.muli %arg1, %c1_i32 : i32
    %1 = arith.addi %0, %arg2 : i32
    %c0_i32 = arith.constant 0 : i32
    %c0_i32_0 = arith.constant 0 : i32
    return %arg0, %1, %c0_i32 : i32, i32, i32
  }
  func.func @transform_2(%arg0: i32, %arg1: i32, %arg2: i32) -> (i32, i32, i32) {
    %c1_i32 = arith.constant 1 : i32
    %0 = arith.muli %arg0, %c1_i32 : i32
    %1 = arith.addi %0, %arg1 : i32
    %c0_i32 = arith.constant 0 : i32
    %c0_i32_0 = arith.constant 0 : i32
    %c0_i32_1 = arith.constant 0 : i32
    return %1, %c0_i32, %c0_i32_0 : i32, i32, i32
  }
}

</mosaic_0001>

<bundles_post_ra>
// kernel: tpu_custom_call.1
= control target key start
LH: loop header
LB: loop body
LE: loop exit
PB: predicated region body
PF: predicated region fallthrough
CT: control target
= control target key end

     0   :  { %7 = vsyncpa [#allocation3], 0  ;;  %s849_s0 = inlined_call_operand.hbm [shape: f32[2,4,8,128], index: 0, kind: input, shape index: {}]   ;;  %s850_s1 = inlined_call_operand.hbm [shape: s32[2,8,128], index: 1, kind: input, shape index: {}]   ;;  %s851_s2 = inlined_call_operand.hbm [shape: f32[2,8,128], index: 2, kind: output, shape index: {}]  }
   0x1   :  { %9 = vsyncpa [#allocation3 + $0x1], 0 }
   0x2   :  { %10 = vsyncpa [#allocation6], 0 }
   0x3   :  { %12 = vsyncpa [#allocation6 + $0x1], 0 }
   0x4   :  { %13 = vsyncpa [#allocation4], 0 }
   0x5   :  { %15 = vsyncpa [#allocation4 + $0x1], 0  ;;  %s707_s9 = smov 0   ;;  %s709_s10 = smov 0  }
   0x6   :  { %s711_s11 = smov 0   ;;  %s713_s12 = smov 0  }
   0x7   :  { %s715_s13 = smov 0   ;;  %s717_s14 = smov 0  }
   0x8 LB: > { %s442_s15 = sadd.s32 4294967295, %s688_s14   ;;  %s443_s16 = sadd.s32 4294967294, %s688_s14   ;;  %s688_s14 = sphi %s717_s14, %s21_s14   ;;  %s684_s13 = sphi %s715_s13, %s861_s13   ;;  %s680_s12 = sphi %s713_s12, %s860_s12   ;;  %s676_s11 = sphi %s711_s11, %s859_s11   ;;  %s672_s10 = sphi %s709_s10, %s858_s10   ;;  %s668_s9 = sphi %s707_s9, %s857_s9  }
   0x9   : > { %s40_s17 = sadd.s32 1, %s684_s13  ;;  %s51_s18 = sadd.s32 1, %s676_s11 }
   0xa   : > { %p42_p0 = scmp.ge.s32.totalorder %s40_s17, 2  ;;  %p58_p1 = scmp.ne.s32.totalorder %s676_s11, %s672_s10 }
   0xb   : > { %p59_p2 = scmp.eq.s32.totalorder %s688_s14, 0  ;;  %p64_p3 = scmp.ne.s32.totalorder %s672_s10, %s668_s9 }
   0xc   : > { %s863_s17 = smov (%p42_p0, %s40_s17), 0  ;;  %p65_p5 = scmp.eq.s32.totalorder %s442_s15, 0 }
   0xd   : > { %p748_p4 = por %p59_p2, %p58_p1  ;;  %s46_s20 = ssub.s32 %s684_s13, %s863_s17 }
   0xe   : > { %p120_p6 = scmp.eq.s32.totalorder %s442_s15, 1  ;;  %p49_p7 = scmp.eq.s32.totalorder %s46_s20, 0 }
   0xf   : > { %p754_p8 = por %p65_p5, %p64_p3  ;;  %p126_p10 = scmp.eq.s32.totalorder %s443_s16, 1 }
  0x10   : > { %p758_p9 = por %p120_p6, %p58_p1  ;;  %p445_p12 = scmp.ge.s32.totalorder %s688_s14, 2 }
  0x11   : > { %s763_s23 = scalar_select %p49_p7, %s676_s11, %s51_s18  }
  0x12   : > { %p765_p11 = por %p126_p10, %p64_p3  ;;  %p477_p13 = scmp.lt.s32.totalorder %s688_s14, 2 }
  0x13   : > { %s146_s25 = sand.u32 1, %s676_s11   ;;  %s459_s27 = sshll.u32 %s684_s13, 5 }
  0x14   : > { %s446_s26 = sshll.u32 %s146_s25, 5  ;;  %s157_s30 = scalar_lea.hbm %s849_s0, %s459_s27 }
  0x15   : > { %s150_s3 = scalar_lea.vmem [#allocation2], %s446_s26  ;;  %s158_s5 = sshll.u32 %s157_s30, 4  ;;  %s159_s5 = int_to_ptr.hbm [resolvable:$true] %s158_s5 }
  0x16   : > { %s160_s4 = sshll.u32 %s150_s3, 4  ;;  %p778_p0 = pnand %p477_p13, %p748_p4  ;;  %s161_s4 = int_to_ptr.vmem [resolvable:$true] %s160_s4 }
  0x17   : > { %p451_p1 = scmp.ge.s32.totalorder %s688_s14, 1  ;;  %s147_s7 = scalar_lea.sflag [#allocation3], %s146_s25 }
  0x18   : > { %s690_s8 = smov 128   ;;  %s691_s15 = smov 8  }
  0x19   : > { %469 = dma.hbm_to_vmem [thread:$0]  (!%p778_p0), %s159_s5, 512, %s161_s4, %s147_s7, %s690_s8, %s690_s8, %s691_s15  }
  0x1a   : > { %p189_p2 = scmp.lt.s32.totalorder %s688_s14, 3  ;;  %s449_s16 = sshll.u32 %s146_s25, 3 }
  0x1b   : > { %s450_s18 = sshll.u32 %s684_s13, 3  ;;  %s174_s27 = scalar_lea.vmem [#allocation5], %s449_s16 }
  0x1c   : > { %p190_p3 = pnand %p451_p1, %p189_p2  ;;  %s180_s19 = scalar_lea.hbm %s850_s1, %s450_s18 }
  0x1d   : > { %s184_s28 = sshll.u32 %s174_s27, 4  ;;  %s182_s29 = sshll.u32 %s180_s19, 4  ;;  %s185_s28 = int_to_ptr.vmem [resolvable:$true] %s184_s28  ;;  %s183_s29 = int_to_ptr.hbm [resolvable:$true] %s182_s29 }
  0x1e   : > { %s171_s30 = scalar_lea.sflag [#allocation6], %s146_s25  ;;  %193 = sbr.rel (%p190_p3) target bundleno = 97 (0x61), region = 28 }
  0x1f   : > { %472 = dma.hbm_to_vmem [thread:$0]  (!%p778_p0), %s183_s29, 128, %s185_s28, %s171_s30  }
  0x20   : > { %s793_s3 = sand.u32 (!%p190_p3), 1, %s672_s10  }
  0x21   : > { %s452_s4 = sshll.u32 (!%p190_p3), %s793_s3, 5  ;;  %s196_s5 = scalar_lea.sflag (!%p190_p3), [#allocation3], %s793_s3 }
  0x22   : > { %s199_s7 = scalar_lea.vmem (!%p190_p3), [#allocation2], %s452_s4 }
  0x23   : > { %655 = dma.done.wait (%p754_p8), %s196_s5, 512  }
  0x24   : > { %657 = vsyncadd (%p754_p8), %s196_s5, 4294966784  ;;  %s453_s25 = sshll.u32 %s793_s3, 3  ;;  %s206_s6 = scalar_lea.sflag [#allocation6], %s793_s3 }
  0x25   : > { %s209_s8 = scalar_lea.vmem [#allocation5], %s453_s25 }
  0x26   : > { %659 = dma.done.wait (%p754_p8), %s206_s6, 128  }
  0x27   : > { %661 = vsyncadd (%p754_p8), %s206_s6, 4294967168  ;;  %v239_v0 = vld [vmem:[%s199_s7] sm:$0xff]  ;;  %v240_v1 = vld [vmem:[%s199_s7 + $0x8] sm:$0xff]  ;;  %v295_v34 = vlaneseq  ;;  %s456_s21 = sshll.u32 %s680_s12, 3  ;;  %s235_s20 = scalar_lea.vmem [#allocation7], %s453_s25 }
  0x28   : > { %v241_v2 = vld [vmem:[%s199_s7 + $0x10] sm:$0xff]  ;;  %v242_v3 = vld [vmem:[%s199_s7 + $0x18] sm:$0xff]  ;;  %v244_v4 = vmax.f32 %v239_v0, %v240_v1  ;;  %v243_v15 = vld [vmem:[%s209_s8] sm:$0xff]  ;;  %s327_s18 = scalar_lea.hbm %s851_s2, %s456_s21  ;;  %s329_s26 = sshll.u32 %s235_s20, 4  ;;  %s330_s26 = int_to_ptr.vmem [resolvable:$true] %s329_s26 }
  0x29   : > { %v245_v5 = vmax.f32 %v241_v2, %v242_v3  ;;  %vm265_vm0 = vcmp.eq.s32.totalorder %v243_v15, 0  ;;  %vm266_vm1 = vcmp.eq.s32.totalorder %v243_v15, 1  ;;  %vm267_vm2 = vcmp.eq.s32.totalorder %v243_v15, 2  ;;  %s331_s19 = sshll.u32 %s327_s18, 4  ;;  %s316_s12 = scalar_lea.sflag [#allocation4], %s793_s3  ;;  %s332_s19 = int_to_ptr.hbm [resolvable:$true] %s331_s19 }
  0x2a   : > { %v269_v22 = vsel %vm265_vm0, %v239_v0, 0.0  ;;  %v270_v23 = vsel %vm266_vm1, %v240_v1, 0.0  ;;  %v271_v26 = vsel %vm267_vm2, %v241_v2, 0.0  ;;  %vm268_vm3 = vcmp.eq.s32.totalorder %v243_v15, 3  ;;  %s616_s27 = sshra.s32 %s332_s19, 4  ;;  %s622_s4 = scalar_lea.hbm %s851_s2, 16  ;;  %s617_s27 = int_to_ptr.hbm [resolvable:$true] %s616_s27 }
  0x2b   : > { %v246_v6 = vmax.f32 %v244_v4, %v245_v5  ;;  %v273_v25 = vadd.f32 %v270_v23, %v269_v22  ;;  %v272_v28 = vsel %vm268_vm3, %v242_v3, 0.0  ;;  %v296_v37 = vshrl.u32 %v295_v34, 7  ;;  %s618_s28 = scalar_lea.hbm %s617_s27, 8  ;;  %p623_p7 = scmp.lt.s32.totalorder %s617_s27, %s851_s2 }
  0x2c   : > { %v298_v38 = vand.u32 127, %v295_v34  ;;  %p619_p4 = scmp.ne.s32.totalorder %s617_s27, %s618_s28  ;;  %p624_p8 = scmp.lt.s32.totalorder %s622_s4, %s618_s28 }
  0x2d   : > { %v247_v7 = vsub.f32 %v239_v0, %v246_v6  ;;  %v248_v8 = vsub.f32 %v240_v1, %v246_v6  ;;  %v249_v9 = vsub.f32 %v241_v2, %v246_v6  ;;  %v250_v10 = vsub.f32 %v242_v3, %v246_v6 }
  0x2e   : > { %v274_v27 = vadd.f32 %v273_v25, %v271_v26  ;;  %v299_v39 = vmul.u32 128, %v296_v37  ;;  %p620_p5 = pnand %p619_p4, %p758_p9  ;;  %p625_p10 = por %p624_p8, %p623_p7 }
  0x2f   : > { %v251_v11 = vmul.f32 1.442695, %v247_v7  ;;  %v253_v12 = vmul.f32 1.442695, %v248_v8  ;;  %v255_v13 = vmul.f32 1.442695, %v249_v9 }
  0x30   : > { %v257_v14 = vmul.f32 1.442695, %v250_v10  ;;  %v275_v31 = vadd.f32 %v274_v27, %v272_v28  ;;  %v302_v41 = vadd.s32 %v299_v39, %v298_v38  ;;  %p621_p6 = pneg %p620_p5 }
  0x31   : > { %530 = vpow2.f32 %v251_v11 }
  0x32   : > { %532 = vpow2.f32 %v253_v12  ;;  %vm303_vm4 = vcmp.lt.s32.totalorder %v302_v41, 256  ;;  %p626_p13 = pnand %p625_p10, %p621_p6 }
  0x33   : > { %534 = vpow2.f32 %v255_v13 }
  0x34   : > { %536 = vpow2.f32 %v257_v14 }
  0x37   : > { %v531_v16 = vpop.eup %530 }
  0x38   : > { %v533_v17 = vpop.eup %532 }
  0x39   : > { %v535_v18 = vpop.eup %534  ;;  %v259_v19 = vadd.f32 %v533_v17, %v531_v16 }
  0x3a   : > { %v537_v20 = vpop.eup %536 }
  0x3b   : > { %v260_v21 = vadd.f32 %v535_v18, %v259_v19 }
  0x3d   : > { %v261_v24 = vadd.f32 %v537_v20, %v260_v21 }
  0x3f   : > { %538 = vlog2.f32 %v261_v24 }
  0x45   : > { %v539_v29 = vpop.eup %538 }
  0x46   : > { %v263_v30 = vmul.f32 0.6931472, %v539_v29 }
  0x48   : > { %v264_v32 = vadd.f32 %v263_v30, %v246_v6 }
  0x4a   : > { %v276_v33 = vsub.f32 %v264_v32, %v275_v31 }
  0x4c   : > { %v277_v35 = vsub.f32 0.0, %v276_v33 }
  0x4e   : > { %v278_v36 = vmul.f32 1.442695, %v277_v35 }
  0x50   : > { %540 = vpow2.f32 %v278_v36 }
  0x56   : > { %v541_v40 = vpop.eup %540 }
  0x57   : > { %v280_v42 = vsub.f32 1.0, %v541_v40 }
  0x59   : > { %v281_v43 = vmul.f32 %v280_v42, %v280_v42 }
  0x5b   : > { %v282_v44 = vmul.f32 %v281_v43, %v276_v33 }
  0x5d   : > { %v304_v45 = vsel %vm303_vm4, %v282_v44, 0.0 }
  0x5e   : > { %307 = vst [vmem:[%s235_s20] sm:$0xff] %v304_v45 }
  0x5f   : > { %629 = shalt.err (!%p626_p13)
}
  0x60   : > { %464 = dma.vmem_to_hbm [thread:$0]  (%p758_p9), %s330_s26, 128, %s332_s19, %s316_s12  }
  0x61 PF: > { %s343_s3 = sand.u32 1, %s668_s9   ;;  %p474_p0 = pnand %p445_p12, %p765_p11 }
  0x62   : > { %s344_s25 = scalar_lea.sflag [#allocation4], %s343_s3 }
  0x63   : > { %p475_p1 = pneg %p474_p0 }
  0x65   : > { %663 = dma.done.wait (%p475_p1), %s344_s25, 128  }
  0x66   : > { %665 = vsyncadd (%p475_p1), %s344_s25, 4294967168  ;;  %s21_s14 = sadd.s32 1, %s688_s14   ;;  %s857_s9 = smov %s672_s10 }
  0x67   : > { %p18_p2 = scmp.ge.s32.totalorder %s21_s14, 4   ;;  %s858_s10 = smov %s676_s11 }
  0x68   : > { %s859_s11 = smov %s763_s23  ;;  %s860_s12 = smov %s684_s13 }
  0x69   : > { %s861_s13 = smov %s863_s17  ;;  %20 = sbr.rel (!%p18_p2) target bundleno = 8 (0x8), region = 98 }
  0x6e   :  { %350 = vsyncpa [#allocation3], 1 }
  0x6f   :  { %352 = vsyncpa [#allocation3 + $0x1], 1 }
  0x70   :  { %353 = vsyncpa [#allocation6], 1 }
  0x71   :  { %355 = vsyncpa [#allocation6 + $0x1], 1 }
  0x72   :  { %356 = vsyncpa [#allocation4], 1 }
  0x73   :  { %358 = vsyncpa [#allocation4 + $0x1], 1 }

</bundles_post_ra>
